<compile_context>
chip_gen: v7x
topology: tpu7x:2x2x1
jax: 0.10.0
libtpu: 0.0.40
codegen_flags: <defaults>
</compile_context>

<pallas_src>
import functools

import jax
import jax.numpy as jnp
from jax.experimental import pallas as pl
from jax.experimental.pallas import tpu as pltpu


def _round_up(v: int, m: int) -> int:
    return ((v + m - 1) // m) * m


def _cdiv(a: int, b: int) -> int:
    return (a + b - 1) // b


def _dist2cycle_kernel(x_ref, m_ref, b_ref, o_ref):
    """One tile of edges, lane-dense in and out.

    x_ref : [PR, E*C]   packed edge features (E edges per row, caller dtype)
    m_ref : [E*C, 2*E]  block-diagonal +/- (w1 - w0) redistribution matrix (f32)
    b_ref : [1, 2*E]    +/- (b1 - b0) pattern (f32)
    o_ref : [PR, 2*E]   softmax probs, lanes (2e, 2e+1) = (p0, p1) of edge e
    """
    x = x_ref[...].astype(jnp.float32)                                 # [PR, E*C]
    # Signed logit difference, already interleaved: lane 2e -> -d, 2e+1 -> +d.
    s = jnp.dot(x, m_ref[...], preferred_element_type=jnp.float32)    # [PR, 2E]
    s = s + b_ref[...]                                                 # broadcast

    # 2-class softmax == elementwise sigmoid(s), numerically stable form that
    # preserves the small-probability tail (p_small = z * inv, not 1 - p_large).
    z = jnp.exp(-jnp.abs(s))                        # in (0, 1]; never overflows
    t = 1.0 + z
    r = pl.reciprocal(t, approx=True)               # EUP slot
    r = r * (2.0 - t * r)                           # one Newton step -> ~f32 exact
    p = jnp.where(s >= 0.0, r, z * r)               # sigmoid(s), accurate tails

    o_ref[...] = p.astype(o_ref.dtype)


@functools.partial(jax.jit, static_argnames=("max_tile_edges",))
def dist2cycle_forward(x_1e, Linv, adjacency, weight, bias, *, max_tile_edges=65536):
    """Pallas implementation of Dist2Cycle.forward.

    x_1e   : [n_edges, channels] edge features (f32 or bf16)
    Linv, adjacency : unused (kept to mirror the PyTorch signature)
    weight : [2, channels]  (PyTorch nn.Linear weight layout)
    bias   : [2]

    Returns [n_edges, 2] softmax probabilities (float32).
    """
    del Linv, adjacency  # not used by the reference forward pass
    n, c = x_1e.shape
    itemsize = jnp.dtype(x_1e.dtype).itemsize

    # Lane-dense packing: E edges per packed row so that E*C and 2*E are both
    # multiples of 128 (E = 64 for even C, 128 for odd C).
    e_per_row = 64 if c % 2 == 0 else 128
    lanes_in = e_per_row * c
    lanes_out = 2 * e_per_row
    gran = 8 * e_per_row          # edges per 8-sublane packed-row group

    # ---- tile sizing ------------------------------------------------------
    n_gran = _round_up(max(n, 1), gran)
    tile_edges = min(_round_up(max_tile_edges, gran), n_gran)
    # Keep the input block around <= 4 MiB (double-buffered it stays well under
    # every generation's scoped-VMEM default, including v5e's 16 MiB).
    budget_edges = max(gran, ((4 << 20) // max(1, c * itemsize)) // gran * gran)
    tile_edges = min(tile_edges, budget_edges)
    # v7x megacore: prefer >= 2 grid steps whenever the problem has >= 2 granules.
    if n_gran >= 2 * gran and tile_edges >= n_gran:
        tile_edges = _round_up(_cdiv(n_gran, 2), gran)
    n_steps = _cdiv(n_gran, tile_edges)
    n_pad = n_steps * tile_edges
    pr_tile = tile_edges // e_per_row          # packed rows per grid step (mult of 8)
    n_rows = n_pad // e_per_row                # total packed rows

    # ---- pack x lane-dense (row-major reshape, no transpose) --------------
    x_p = x_1e if n_pad == n else jnp.pad(x_1e, ((0, n_pad - n), (0, 0)))
    x_packed = x_p.reshape(n_rows, lanes_in)   # x_packed[r, e*C + c] = x[r*E+e, c]

    # ---- fold Linear(C->2) + softmax into a signed logit-difference matmul -
    w = jnp.asarray(weight, jnp.float32)       # [2, C]
    b = jnp.asarray(bias, jnp.float32)         # [2]
    wd = w[1] - w[0]                           # [C]
    bd = b[1] - b[0]                           # scalar
    blk = jnp.stack([-wd, wd], axis=1)         # [C, 2]: col0 = -wd, col1 = +wd
    # Block-diagonal: M[e*C + c, 2e + j] = blk[c, j]
    m_mat = jnp.kron(jnp.eye(e_per_row, dtype=jnp.float32), blk)   # [E*C, 2E]
    b_vec = jnp.tile(jnp.stack([-bd, bd]), e_per_row).reshape(1, lanes_out)

    # ---- VMEM budget + cost estimate ---------------------------------------
    in_blk = pr_tile * lanes_in * itemsize
    out_blk = pr_tile * lanes_out * 4
    need = (2 * (in_blk + out_blk)              # double-buffered x / out blocks
            + 2 * (lanes_in * lanes_out * 4 + 4096)   # M + bias row (dbl-buffered)
            + pr_tile * lanes_in * 4            # in-kernel f32 cast temporary
            + (2 << 20))                        # slack
    vmem_limit = int(min(64 << 20, max(16 << 20, need)))

    cost = pl.CostEstimate(
        flops=2 * n_rows * lanes_in * lanes_out,
        transcendentals=2 * n_rows * lanes_out,
        bytes_accessed=(n_rows * lanes_in * itemsize
                        + lanes_in * lanes_out * 4
                        + n_rows * lanes_out * 4),
    )

    out_packed = pl.pallas_call(
        _dist2cycle_kernel,
        out_shape=jax.ShapeDtypeStruct((n_rows, lanes_out), jnp.float32),
        grid=(n_steps,),
        in_specs=[
            pl.BlockSpec((pr_tile, lanes_in), lambda i: (i, 0)),   # packed x
            pl.BlockSpec((lanes_in, lanes_out), lambda i: (0, 0)),  # M (fetched once)
            pl.BlockSpec((1, lanes_out), lambda i: (0, 0)),         # +/- bias row
        ],
        out_specs=pl.BlockSpec((pr_tile, lanes_out), lambda i: (i, 0)),
        compiler_params=pltpu.CompilerParams(
            dimension_semantics=("parallel",),
            vmem_limit_bytes=vmem_limit,
        ),
        cost_estimate=cost,
    )(x_packed, m_mat, b_vec)

    # Free (row-major) reshape to the interleaved [n_pad, 2]; drop padded rows.
    return out_packed.reshape(n_pad, 2)[:n]


if __name__ == "__main__":
    key = jax.random.PRNGKey(0)
    k_x1, k_x2, k_w, k_b, k_l, k_a = jax.random.split(key, 6)

    channels = 8

    # nn.Linear(channels, 2): weight [2, channels], bias [2]
    bound = 1.0 / (channels ** 0.5)
    weight = jax.random.uniform(k_w, (2, channels), minval=-bound, maxval=bound,
                                dtype=jnp.float32)
    bias = jax.random.uniform(k_b, (2,), minval=-bound, maxval=bound,
                              dtype=jnp.float32)

    def run_case(kx, n_edges, **kw):
        x_1e = jax.random.normal(kx, (n_edges, channels), dtype=jnp.float32)
        # Linv / adjacency are unused by the reference forward; kept for parity.
        Linv = jax.random.normal(k_l, (n_edges, n_edges), dtype=jnp.float32)
        adjacency = jax.random.normal(k_a, (n_edges, n_edges), dtype=jnp.float32)
        out = jax.block_until_ready(
            dist2cycle_forward(x_1e, Linv, adjacency, weight, bias, **kw))
        ref = jax.nn.softmax(x_1e @ weight.T + bias, axis=-1)
        assert out.shape == (n_edges, 2), f"bad shape {out.shape}"
        assert jnp.allclose(out, ref, atol=5e-5), f"mismatch vs reference (n={n_edges})"
        return out

    # Case 1: small problem, single grid step (384 edges pad to 512).
    run_case(k_x1, 384)

    # Case 2: ragged edge count spanning >= 2 granules -> forced 2 grid steps
    # (exercises tiling, padding 640 -> 1024, and the v7x two-step split).
    run_case(k_x2, 640)

    print("KERNEL_OK")
</pallas_src>

<mosaic_0001>
module attributes {stable_mosaic.version = 11 : i64} {
  func.func @_dist2cycle_kernel(%arg0: i32, %arg1: memref<8x512xf32, #tpu.memory_space<vmem>>, %arg2: memref<512x128xf32, #tpu.memory_space<vmem>>, %arg3: memref<1x128xf32, #tpu.memory_space<vmem>>, %arg4: memref<8x128xf32, #tpu.memory_space<vmem>>) attributes {dimension_semantics = [#tpu.dimension_semantics<parallel>], iteration_bounds = array<i64: 1>, scalar_prefetch = 0 : i64, scratch_operands = 0 : i64, tpu.core_type = #tpu.core_type<tc>, window_params = [{transform_indices = @transform_0, window_bounds = array<i64: 8, 512>}, {pipeline_mode = #tpu.pipeline_mode<synchronous>, transform_indices = @transform_1, window_bounds = array<i64: 512, 128>}, {pipeline_mode = #tpu.pipeline_mode<synchronous>, transform_indices = @transform_2, window_bounds = array<i64: 1, 128>}, {transform_indices = @transform_3, window_bounds = array<i64: 8, 128>}]} {
    %c0 = arith.constant 0 : index
    %c0_0 = arith.constant 0 : index
    %0 = vector.load %arg1[%c0, %c0_0] : memref<8x512xf32, #tpu.memory_space<vmem>>, vector<8x512xf32>
    %c0_1 = arith.constant 0 : index
    %c0_2 = arith.constant 0 : index
    %1 = vector.load %arg2[%c0_1, %c0_2] : memref<512x128xf32, #tpu.memory_space<vmem>>, vector<512x128xf32>
    %cst = arith.constant dense<0.000000e+00> : vector<8x128xf32>
    %2 = tpu.matmul %0, %1, %cst {dimension_numbers = #tpu.dot_dimension_numbers<[1], [0], [0], [1], [0, 0, 1, 1], [], []>} : vector<8x512xf32>, vector<512x128xf32>, vector<8x128xf32> -> vector<8x128xf32>
    %c0_3 = arith.constant 0 : index
    %c0_4 = arith.constant 0 : index
    %3 = vector.load %arg3[%c0_3, %c0_4] : memref<1x128xf32, #tpu.memory_space<vmem>>, vector<1x128xf32>
    %4 = vector.broadcast %3 : vector<1x128xf32> to vector<8x128xf32>
    %5 = arith.addf %2, %4 : vector<8x128xf32>
    %6 = math.absf %5 : vector<8x128xf32>
    %cst_5 = arith.constant 0.000000e+00 : f32
    %7 = vector.broadcast %cst_5 : f32 to vector<8x128xf32>
    %8 = arith.subf %7, %6 : vector<8x128xf32>
    %9 = math.exp %8 : vector<8x128xf32>
    %cst_6 = arith.constant 1.000000e+00 : f32
    %10 = vector.broadcast %cst_6 : f32 to vector<8x128xf32>
    %11 = arith.addf %10, %9 : vector<8x128xf32>
    %12 = tpu.reciprocal %11 {approx = true} : vector<8x128xf32> -> vector<8x128xf32>
    %13 = arith.mulf %11, %12 : vector<8x128xf32>
    %cst_7 = arith.constant 2.000000e+00 : f32
    %14 = vector.broadcast %cst_7 : f32 to vector<8x128xf32>
    %15 = arith.subf %14, %13 : vector<8x128xf32>
    %16 = arith.mulf %12, %15 : vector<8x128xf32>
    %cst_8 = arith.constant 0.000000e+00 : f32
    %17 = vector.broadcast %cst_8 : f32 to vector<8x128xf32>
    %18 = arith.cmpf oge, %5, %17 : vector<8x128xf32>
    %19 = arith.mulf %9, %16 : vector<8x128xf32>
    %20 = arith.select %18, %16, %19 : vector<8x128xi1>, vector<8x128xf32>
    %c0_9 = arith.constant 0 : index
    %c0_10 = arith.constant 0 : index
    %21 = vector.load %arg4[%c0_9, %c0_10] : memref<8x128xf32, #tpu.memory_space<vmem>>, vector<8x128xf32>
    tpu.vector_store %arg4[%c0_9, %c0_10], %20 {strides = array<i32>} : memref<8x128xf32, #tpu.memory_space<vmem>>, vector<8x128xf32>,
    return
  }
  func.func @transform_0(%arg0: i32) -> (i32, i32) {
    %c0_i32 = arith.constant 0 : i32
    %c0_i32_0 = arith.constant 0 : i32
    return %arg0, %c0_i32 : i32, i32
  }
  func.func @transform_1(%arg0: i32) -> (i32, i32) {
    %c0_i32 = arith.constant 0 : i32
    %c0_i32_0 = arith.constant 0 : i32
    %c0_i32_1 = arith.constant 0 : i32
    return %c0_i32, %c0_i32_0 : i32, i32
  }
  func.func @transform_2(%arg0: i32) -> (i32, i32) {
    %c0_i32 = arith.constant 0 : i32
    %c0_i32_0 = arith.constant 0 : i32
    %c0_i32_1 = arith.constant 0 : i32
    return %c0_i32, %c0_i32_0 : i32, i32
  }
  func.func @transform_3(%arg0: i32) -> (i32, i32) {
    %c0_i32 = arith.constant 0 : i32
    %c0_i32_0 = arith.constant 0 : i32
    return %arg0, %c0_i32 : i32, i32
  }
}

</mosaic_0001>

<bundles_post_ra>
// kernel: tile.8
= control target key start
LH: loop header
LB: loop body
LE: loop exit
PB: predicated region body
PF: predicated region fallthrough
CT: control target
= control target key end

     0   :  { %s64_s0 = inlined_call_operand.vmem [shape: f32[2], index: 0, kind: input, shape index: {}]   ;;  %s65_s1 = inlined_call_operand.vmem [shape: f32[64,2], index: 1, kind: output, shape index: {}]  }
   0x1   :  { %v4_v0 = vld [vmem:[%s64_s0] ss:$0 sm:$0xff] }
   0x2   :  { %5 = vst [vmem:[%s65_s1] sm:$0xff] %v4_v0  ;;  %20 = vst [vmem:[%s65_s1 + $0x8] sm:$0xff] %v4_v0 }
   0x3   :  { %21 = vst [vmem:[%s65_s1 + $0x10] sm:$0xff] %v4_v0  ;;  %22 = vst [vmem:[%s65_s1 + $0x18] sm:$0xff] %v4_v0 }
   0x4   :  { %23 = vst [vmem:[%s65_s1 + $0x20] sm:$0xff] %v4_v0  ;;  %24 = vst [vmem:[%s65_s1 + $0x28] sm:$0xff] %v4_v0 }
   0x5   :  { %25 = vst [vmem:[%s65_s1 + $0x30] sm:$0xff] %v4_v0  ;;  %26 = vst [vmem:[%s65_s1 + $0x38] sm:$0xff] %v4_v0 }

// kernel: tile.9
= control target key start
LH: loop header
LB: loop body
LE: loop exit
PB: predicated region body
PF: predicated region fallthrough
CT: control target
= control target key end

     0   :  { %s515_s10 = smov 126   ;;  %s516_s11 = smov 122   ;;  %vm3_vm0 = vcmask 15360   ;;  %vm9_vm1 = vcmask 1048560   ;;  %vm21_vm2 = vcmask 1015760   ;;  %vm15_vm3 = vcmask 1032160   ;;  %s783_s0 = inlined_call_operand.vmem [shape: f32[64,2], index: 0, kind: input, shape index: {}]   ;;  %s784_s1 = inlined_call_operand.vmem [shape: f32[1,128], index: 1, kind: output, shape index: {}]  }
   0x1   :  { %v389_v0 = vld [vmem:[%s783_s0 + $0x3f] sm:$0x1]   ;;  %v391_v1 = vld [vmem:[%s783_s0 + $0x3d] sm:$0x1]   ;;  %v390_v2 = vld [vmem:[%s783_s0 + $0x3e] sm:$0x1]  }
   0x2   :  { %7 = vrot.lane.b32.xlu0 %v389_v0, %s515_s10  ;;  %19 = vrot.lane.b32.xlu1 %v391_v1, %s516_s11  ;;  %v392_v3 = vld [vmem:[%s783_s0 + $0x3c] sm:$0x1]   ;;  %s517_s16 = smov 124   ;;  %s518_s17 = smov 120   ;;  %v393_v4 = vld [vmem:[%s783_s0 + $0x3b] sm:$0x1]  }
   0x3   :  { %v394_v5 = vld [vmem:[%s783_s0 + $0x3a] sm:$0x1]   ;;  %s519_s22 = smov 118   ;;  %s520_s23 = smov 116   ;;  %v395_v6 = vld [vmem:[%s783_s0 + $0x39] sm:$0x1]  }
   0x4   :  { %v396_v7 = vld [vmem:[%s783_s0 + $0x38] sm:$0x1]   ;;  %s521_s28 = smov 114   ;;  %s522_s29 = smov 112   ;;  %v397_v8 = vld [vmem:[%s783_s0 + $0x37] sm:$0x1]  }
   0x5   :  { %v398_v9 = vld [vmem:[%s783_s0 + $0x36] sm:$0x1]   ;;  %s523_s5 = smov 110   ;;  %s524_s6 = smov 108   ;;  %v399_v10 = vld [vmem:[%s783_s0 + $0x35] sm:$0x1]  }
   0x6   :  { %13 = vrot.lane.b32.xlu0 %v390_v2, %s517_s16  ;;  %25 = vrot.lane.b32.xlu1 %v392_v3, %s518_s17  ;;  %v400_v11 = vld [vmem:[%s783_s0 + $0x34] sm:$0x1]   ;;  %s525_s11 = smov 106   ;;  %s526_s12 = smov 104   ;;  %v401_v12 = vld [vmem:[%s783_s0 + $0x33] sm:$0x1]  }
   0x7   :  { %v402_v13 = vld [vmem:[%s783_s0 + $0x32] sm:$0x1]   ;;  %s527_s17 = smov 102   ;;  %s528_s18 = smov 100   ;;  %v403_v14 = vld [vmem:[%s783_s0 + $0x31] sm:$0x1]  }
   0x8   :  { %v404_v15 = vld [vmem:[%s783_s0 + $0x30] sm:$0x1]   ;;  %v2_v16 = vld [vmem:[%s783_s0] sm:$0x1]   ;;  %s529_s25 = smov 98   ;;  %s530_s26 = smov 96  }
   0x9   :  { %v405_v17 = vld [vmem:[%s783_s0 + $0x2f] sm:$0x1]   ;;  %v406_v18 = vld [vmem:[%s783_s0 + $0x2e] sm:$0x1]   ;;  %4 = vst.msk [vmem:[#allocation0] sm:$0x1] %vm3_vm0, %v2_v16  }
   0xa   :  { %31 = vrot.lane.b32.xlu0 %v393_v4, %s519_s22  ;;  %37 = vrot.lane.b32.xlu1 %v394_v5, %s520_s23  ;;  %s531_s2 = smov 94   ;;  %s532_s3 = smov 92   ;;  %v407_v19 = vld [vmem:[%s783_s0 + $0x2d] sm:$0x1]   ;;  %v408_v20 = vld [vmem:[%s783_s0 + $0x2c] sm:$0x1]  }
   0xb   :  { %s533_s8 = smov 90   ;;  %s534_s9 = smov 88   ;;  %v409_v21 = vld [vmem:[%s783_s0 + $0x2b] sm:$0x1]   ;;  %v410_v22 = vld [vmem:[%s783_s0 + $0x2a] sm:$0x1]  }
   0xc   :  { %s535_s14 = smov 86   ;;  %s536_s15 = smov 84   ;;  %v411_v23 = vld [vmem:[%s783_s0 + $0x29] sm:$0x1]   ;;  %v412_v24 = vld [vmem:[%s783_s0 + $0x28] sm:$0x1]  }
   0xd   :  { %s537_s20 = smov 82   ;;  %s538_s21 = smov 80   ;;  %v413_v25 = vld [vmem:[%s783_s0 + $0x27] sm:$0x1]   ;;  %v414_v26 = vld [vmem:[%s783_s0 + $0x26] sm:$0x1]  }
   0xe   :  { %43 = vrot.lane.b32.xlu0 %v395_v6, %s521_s28  ;;  %49 = vrot.lane.b32.xlu1 %v396_v7, %s522_s29  ;;  %s540_s27 = smov 76   ;;  %v415_v27 = vld [vmem:[%s783_s0 + $0x25] sm:$0x1]   ;;  %v416_v28 = vld [vmem:[%s783_s0 + $0x24] sm:$0x1]   ;;  %s542_s4 = smov 72  }
   0xf   :  { %v417_v29 = vld [vmem:[%s783_s0 + $0x23] sm:$0x1]   ;;  %v418_v30 = vld [vmem:[%s783_s0 + $0x22] sm:$0x1]   ;;  %s544_s10 = smov 68   ;;  %s546_s16 = smov 64  }
  0x10   :  { %v419_v31 = vld [vmem:[%s783_s0 + $0x21] sm:$0x1]   ;;  %v420_v32 = vld [vmem:[%s783_s0 + $0x20] sm:$0x1]   ;;  %v421_v33 = vld [vmem:[%s783_s0 + $0x1f] sm:$0x1]  }
  0x11   :  { %v422_v34 = vld [vmem:[%s783_s0 + $0x1e] sm:$0x1]   ;;  %s548_s22 = smov 60   ;;  %v423_v35 = vld [vmem:[%s783_s0 + $0x1d] sm:$0x1]   ;;  %s550_s28 = smov 56  }
  0x12   :  { %55 = vrot.lane.b32.xlu0 %v397_v8, %s523_s5  ;;  %61 = vrot.lane.b32.xlu1 %v398_v9, %s524_s6  ;;  %v424_v36 = vld [vmem:[%s783_s0 + $0x1c] sm:$0x1]   ;;  %v425_v37 = vld [vmem:[%s783_s0 + $0x1b] sm:$0x1]   ;;  %s552_s5 = smov 52   ;;  %s558_s23 = smov 40  }
  0x13   :  { %v426_v38 = vld [vmem:[%s783_s0 + $0x1a] sm:$0x1]   ;;  %v427_v39 = vld [vmem:[%s783_s0 + $0x19] sm:$0x1]   ;;  %v428_v40 = vld [vmem:[%s783_s0 + $0x18] sm:$0x1]  }
  0x14   :  { %v429_v41 = vld [vmem:[%s783_s0 + $0x17] sm:$0x1]   ;;  %v430_v42 = vld [vmem:[%s783_s0 + $0x16] sm:$0x1]   ;;  %v431_v43 = vld [vmem:[%s783_s0 + $0x15] sm:$0x1]  }
  0x15   :  { %v432_v44 = vld [vmem:[%s783_s0 + $0x14] sm:$0x1]   ;;  %v433_v45 = vld [vmem:[%s783_s0 + $0x13] sm:$0x1]   ;;  %v434_v46 = vld [vmem:[%s783_s0 + $0x12] sm:$0x1]  }
  0x16   :  { %67 = vrot.lane.b32.xlu0 %v399_v10, %s525_s11  ;;  %73 = vrot.lane.b32.xlu1 %v400_v11, %s526_s12  ;;  %s554_s11 = smov 48   ;;  %s560_s29 = smov 36   ;;  %v435_v47 = vld [vmem:[%s783_s0 + $0x11] sm:$0x1]   ;;  %v436_v48 = vld [vmem:[%s783_s0 + $0x10] sm:$0x1]  }
  0x17   :  { %s562_s6 = smov 32   ;;  %v437_v49 = vld [vmem:[%s783_s0 + $0xf] sm:$0x1]   ;;  %v438_v50 = vld [vmem:[%s783_s0 + $0xe] sm:$0x1]   ;;  %s564_s12 = smov 28  }
  0x18   :  { %v439_v51 = vld [vmem:[%s783_s0 + $0xd] sm:$0x1]   ;;  %v440_v52 = vld [vmem:[%s783_s0 + $0xc] sm:$0x1]   ;;  %v441_v53 = vld [vmem:[%s783_s0 + $0xb] sm:$0x1]  }
  0x19   :  { %v442_v54 = vld [vmem:[%s783_s0 + $0xa] sm:$0x1]   ;;  %s568_s24 = smov 20   ;;  %v443_v55 = vld [vmem:[%s783_s0 + $0x9] sm:$0x1]   ;;  %s570_s30 = smov 16  }
  0x1a   :  { %79 = vrot.lane.b32.xlu0 %v401_v12, %s527_s17  ;;  %85 = vrot.lane.b32.xlu1 %v402_v13, %s528_s18  ;;  %s556_s17 = smov 44   ;;  %s566_s18 = smov 24   ;;  %v444_v56 = vld [vmem:[%s783_s0 + $0x8] sm:$0x1]   ;;  %v445_v57 = vld [vmem:[%s783_s0 + $0x7] sm:$0x1]  }
  0x1b   :  { %v446_v58 = vld [vmem:[%s783_s0 + $0x6] sm:$0x1]   ;;  %s572_s7 = smov 12   ;;  %v447_v59 = vld [vmem:[%s783_s0 + $0x5] sm:$0x1]   ;;  %s574_s13 = smov 8  }
  0x1c   :  { %v448_v60 = vld [vmem:[%s783_s0 + $0x4] sm:$0x1]   ;;  %v449_v63 = vld [vmem:[%s783_s0 + $0x3] sm:$0x1]   ;;  %v450_v0 = vld [vmem:[%s783_s0 + $0x2] sm:$0x1]  }
  0x1d   :  { %vm27_vm4 = vcmask 999360   ;;  %vm33_vm5 = vcmask 982960   ;;  %s576_s19 = smov 4   ;;  %v451_v3 = vld [vmem:[%s783_s0 + $0x1] sm:$0x1]   ;;  %vm39_vm6 = vcmask 966560  }
  0x1e   :  { %91 = vrot.lane.b32.xlu0 %v403_v14, %s529_s25  ;;  %97 = vrot.lane.b32.xlu1 %v404_v15, %s530_s26  ;;  %s539_s26 = smov 78   ;;  %s577_s0 = smov 2   ;;  %vm45_vm7 = vcmask 950160   ;;  %vm51_vm8 = vcmask 933760   ;;  %vm57_vm9 = vcmask 917360   ;;  %vm63_vm10 = vcmask 900960  }
  0x1f   :  { %vm69_vm11 = vcmask 884560   ;;  %vm75_vm12 = vcmask 868160   ;;  %vm81_vm13 = vcmask 851760   ;;  %vm87_vm14 = vcmask 835360  }
  0x20   :  { %vm93_vm15 = vcmask 818960   ;;  %vm99_vm0 = vcmask 802560  }
  0x22   :  { %103 = vrot.lane.b32.xlu0 %v405_v17, %s531_s2  ;;  %109 = vrot.lane.b32.xlu1 %v406_v18, %s532_s3  ;;  %s541_s3 = smov 74  }
  0x26   :  { %115 = vrot.lane.b32.xlu0 %v407_v19, %s533_s8  ;;  %121 = vrot.lane.b32.xlu1 %v408_v20, %s534_s9  ;;  %s543_s9 = smov 70  }
  0x2a   :  { %127 = vrot.lane.b32.xlu0 %v409_v21, %s535_s14  ;;  %133 = vrot.lane.b32.xlu1 %v410_v22, %s536_s15  ;;  %s545_s15 = smov 66  }
  0x2e   :  { %139 = vrot.lane.b32.xlu0 %v411_v23, %s537_s20  ;;  %145 = vrot.lane.b32.xlu1 %v412_v24, %s538_s21  ;;  %s547_s21 = smov 62  }
  0x32   :  { %151 = vrot.lane.b32.xlu0 %v413_v25, %s539_s26  ;;  %157 = vrot.lane.b32.xlu1 %v414_v26, %s540_s27  ;;  %s549_s27 = smov 58  }
  0x36   :  { %163 = vrot.lane.b32.xlu0 %v415_v27, %s541_s3  ;;  %169 = vrot.lane.b32.xlu1 %v416_v28, %s542_s4  ;;  %s551_s4 = smov 54  }
  0x3a   :  { %175 = vrot.lane.b32.xlu0 %v417_v29, %s543_s9  ;;  %181 = vrot.lane.b32.xlu1 %v418_v30, %s544_s10  ;;  %s553_s10 = smov 50  }
  0x3e   :  { %187 = vrot.lane.b32.xlu0 %v419_v31, %s545_s15  ;;  %193 = vrot.lane.b32.xlu1 %v420_v32, %s546_s16  ;;  %s555_s16 = smov 46  }
  0x42   :  { %199 = vrot.lane.b32.xlu0 %v421_v33, %s547_s21  ;;  %205 = vrot.lane.b32.xlu1 %v422_v34, %s548_s22  ;;  %s557_s22 = smov 42  }
  0x46   :  { %211 = vrot.lane.b32.xlu0 %v423_v35, %s549_s27  ;;  %217 = vrot.lane.b32.xlu1 %v424_v36, %s550_s28  ;;  %s559_s28 = smov 38  }
  0x4a   :  { %223 = vrot.lane.b32.xlu0 %v425_v37, %s551_s4  ;;  %229 = vrot.lane.b32.xlu1 %v426_v38, %s552_s5  ;;  %s561_s5 = smov 34  }
  0x4e   :  { %235 = vrot.lane.b32.xlu0 %v427_v39, %s553_s10  ;;  %241 = vrot.lane.b32.xlu1 %v428_v40, %s554_s11  ;;  %s563_s11 = smov 30  }
  0x52   :  { %247 = vrot.lane.b32.xlu0 %v429_v41, %s555_s16  ;;  %253 = vrot.lane.b32.xlu1 %v430_v42, %s556_s17  ;;  %s565_s17 = smov 26  }
  0x56   :  { %259 = vrot.lane.b32.xlu0 %v431_v43, %s557_s22  ;;  %265 = vrot.lane.b32.xlu1 %v432_v44, %s558_s23  ;;  %s567_s23 = smov 22  }
  0x5a   :  { %271 = vrot.lane.b32.xlu0 %v433_v45, %s559_s28  ;;  %277 = vrot.lane.b32.xlu1 %v434_v46, %s560_s29  ;;  %s569_s29 = smov 18  }
  0x5e   :  { %283 = vrot.lane.b32.xlu0 %v435_v47, %s561_s5  ;;  %289 = vrot.lane.b32.xlu1 %v436_v48, %s562_s6  ;;  %s571_s6 = smov 14  }
  0x62   :  { %295 = vrot.lane.b32.xlu0 %v437_v49, %s563_s11  ;;  %301 = vrot.lane.b32.xlu1 %v438_v50, %s564_s12  ;;  %s573_s12 = smov 10  }
  0x66   :  { %307 = vrot.lane.b32.xlu0 %v439_v51, %s565_s17  ;;  %313 = vrot.lane.b32.xlu1 %v440_v52, %s566_s18  ;;  %s575_s18 = smov 6  }
  0x6a   :  { %319 = vrot.lane.b32.xlu0 %v441_v53, %s567_s23  ;;  %325 = vrot.lane.b32.xlu1 %v442_v54, %s568_s24 }
  0x6e   :  { %331 = vrot.lane.b32.xlu0 %v443_v55, %s569_s29  ;;  %337 = vrot.lane.b32.xlu1 %v444_v56, %s570_s30 }
  0x72   :  { %343 = vrot.lane.b32.xlu0 %v445_v57, %s571_s6  ;;  %349 = vrot.lane.b32.xlu1 %v446_v58, %s572_s7 }
  0x74   :  { %v8_v61 = vpop.permute.xlu0 %7   ;;  %v20_v62 = vpop.permute.xlu1 %19  }
  0x75   :  { %10 = vst.msk [vmem:[#allocation0] sm:$0x1] %vm9_vm1, %v8_v61   ;;  %vm105_vm1 = vcmask 786160  }
  0x76   :  { %355 = vrot.lane.b32.xlu0 %v447_v59, %s573_s12  ;;  %361 = vrot.lane.b32.xlu1 %v448_v60, %s574_s13 }
  0x78   :  { %v14_v1 = vpop.permute.xlu0 %13   ;;  %v26_v2 = vpop.permute.xlu1 %25  }
  0x79   :  { %16 = vst.msk [vmem:[#allocation0] sm:$0x1] %vm15_vm3, %v14_v1   ;;  %vm117_vm3 = vcmask 753360  }
  0x7a   :  { %22 = vst.msk [vmem:[#allocation0] sm:$0x1] %vm21_vm2, %v20_v62   ;;  %367 = vrot.lane.b32.xlu0 %v449_v63, %s575_s18  ;;  %373 = vrot.lane.b32.xlu1 %v450_v0, %s576_s19  ;;  %vm111_vm2 = vcmask 769760  }
  0x7b   :  { %28 = vst.msk [vmem:[#allocation0] sm:$0x1] %vm27_vm4, %v26_v2   ;;  %vm123_vm4 = vcmask 736960  }
  0x7c   :  { %v32_v4 = vpop.permute.xlu0 %31   ;;  %v38_v5 = vpop.permute.xlu1 %37  }
  0x7d   :  { %34 = vst.msk [vmem:[#allocation0] sm:$0x1] %vm33_vm5, %v32_v4   ;;  %vm129_vm5 = vcmask 720560  }
  0x7e   :  { %379 = vrot.lane.b32.xlu0 %v451_v3, %s577_s0  ;;  %40 = vst.msk [vmem:[#allocation0] sm:$0x1] %vm39_vm6, %v38_v5   ;;  %vm135_vm6 = vcmask 704160  }
  0x80   :  { %v44_v6 = vpop.permute.xlu0 %43   ;;  %v50_v7 = vpop.permute.xlu1 %49  }
  0x81   :  { %46 = vst.msk [vmem:[#allocation0] sm:$0x1] %vm45_vm7, %v44_v6   ;;  %vm141_vm7 = vcmask 687760  }
  0x82   :  { %52 = vst.msk [vmem:[#allocation0] sm:$0x1] %vm51_vm8, %v50_v7   ;;  %vm147_vm8 = vcmask 671360  }
  0x84   :  { %v56_v8 = vpop.permute.xlu0 %55   ;;  %v62_v9 = vpop.permute.xlu1 %61  }
  0x85   :  { %58 = vst.msk [vmem:[#allocation0] sm:$0x1] %vm57_vm9, %v56_v8   ;;  %vm153_vm9 = vcmask 654960  }
  0x86   :  { %64 = vst.msk [vmem:[#allocation0] sm:$0x1] %vm63_vm10, %v62_v9   ;;  %vm159_vm10 = vcmask 638560  }
  0x88   :  { %v68_v10 = vpop.permute.xlu0 %67   ;;  %v74_v11 = vpop.permute.xlu1 %73  }
  0x89   :  { %70 = vst.msk [vmem:[#allocation0] sm:$0x1] %vm69_vm11, %v68_v10   ;;  %vm165_vm11 = vcmask 622160  }
  0x8a   :  { %76 = vst.msk [vmem:[#allocation0] sm:$0x1] %vm75_vm12, %v74_v11   ;;  %vm171_vm12 = vcmask 605760  }
  0x8c   :  { %v80_v12 = vpop.permute.xlu0 %79   ;;  %v86_v13 = vpop.permute.xlu1 %85  }
  0x8d   :  { %82 = vst.msk [vmem:[#allocation0] sm:$0x1] %vm81_vm13, %v80_v12   ;;  %vm177_vm13 = vcmask 589360  }
  0x8e   :  { %88 = vst.msk [vmem:[#allocation0] sm:$0x1] %vm87_vm14, %v86_v13   ;;  %vm183_vm14 = vcmask 572960  }
  0x90   :  { %v92_v14 = vpop.permute.xlu0 %91   ;;  %v98_v15 = vpop.permute.xlu1 %97  }
  0x91   :  { %94 = vst.msk [vmem:[#allocation0] sm:$0x1] %vm93_vm15, %v92_v14   ;;  %vm189_vm15 = vcmask 556560  }
  0x92   :  { %100 = vst.msk [vmem:[#allocation0] sm:$0x1] %vm99_vm0, %v98_v15   ;;  %vm195_vm0 = vcmask 540160  }
  0x94   :  { %v104_v16 = vpop.permute.xlu0 %103   ;;  %v110_v17 = vpop.permute.xlu1 %109  }
  0x95   :  { %106 = vst.msk [vmem:[#allocation0] sm:$0x1] %vm105_vm1, %v104_v16   ;;  %vm201_vm1 = vcmask 523760  }
  0x96   :  { %112 = vst.msk [vmem:[#allocation0] sm:$0x1] %vm111_vm2, %v110_v17   ;;  %vm207_vm2 = vcmask 507360  }
  0x98   :  { %v116_v18 = vpop.permute.xlu0 %115   ;;  %v122_v19 = vpop.permute.xlu1 %121  }
  0x99   :  { %118 = vst.msk [vmem:[#allocation0] sm:$0x1] %vm117_vm3, %v116_v18   ;;  %vm213_vm3 = vcmask 490960  }
  0x9a   :  { %124 = vst.msk [vmem:[#allocation0] sm:$0x1] %vm123_vm4, %v122_v19   ;;  %vm219_vm4 = vcmask 474560  }
  0x9c   :  { %v128_v20 = vpop.permute.xlu0 %127   ;;  %v134_v21 = vpop.permute.xlu1 %133  }
  0x9d   :  { %130 = vst.msk [vmem:[#allocation0] sm:$0x1] %vm129_vm5, %v128_v20   ;;  %vm225_vm5 = vcmask 458160  }
  0x9e   :  { %136 = vst.msk [vmem:[#allocation0] sm:$0x1] %vm135_vm6, %v134_v21   ;;  %vm231_vm6 = vcmask 441760  }
  0xa0   :  { %v140_v22 = vpop.permute.xlu0 %139   ;;  %v146_v23 = vpop.permute.xlu1 %145  }
  0xa1   :  { %142 = vst.msk [vmem:[#allocation0] sm:$0x1] %vm141_vm7, %v140_v22   ;;  %vm237_vm7 = vcmask 425360  }
  0xa2   :  { %148 = vst.msk [vmem:[#allocation0] sm:$0x1] %vm147_vm8, %v146_v23   ;;  %vm243_vm8 = vcmask 408960  }
  0xa4   :  { %v152_v24 = vpop.permute.xlu0 %151   ;;  %v158_v25 = vpop.permute.xlu1 %157  }
  0xa5   :  { %154 = vst.msk [vmem:[#allocation0] sm:$0x1] %vm153_vm9, %v152_v24   ;;  %vm249_vm9 = vcmask 392560  }
  0xa6   :  { %160 = vst.msk [vmem:[#allocation0] sm:$0x1] %vm159_vm10, %v158_v25   ;;  %vm255_vm10 = vcmask 376160  }
  0xa8   :  { %v164_v26 = vpop.permute.xlu0 %163   ;;  %v170_v27 = vpop.permute.xlu1 %169  }
  0xa9   :  { %166 = vst.msk [vmem:[#allocation0] sm:$0x1] %vm165_vm11, %v164_v26   ;;  %vm261_vm11 = vcmask 359760  }
  0xaa   :  { %172 = vst.msk [vmem:[#allocation0] sm:$0x1] %vm171_vm12, %v170_v27   ;;  %vm267_vm12 = vcmask 343360  }
  0xac   :  { %v176_v28 = vpop.permute.xlu0 %175   ;;  %v182_v29 = vpop.permute.xlu1 %181  }
  0xad   :  { %178 = vst.msk [vmem:[#allocation0] sm:$0x1] %vm177_vm13, %v176_v28   ;;  %vm273_vm13 = vcmask 326960  }
  0xae   :  { %184 = vst.msk [vmem:[#allocation0] sm:$0x1] %vm183_vm14, %v182_v29   ;;  %vm279_vm14 = vcmask 310560  }
  0xb0   :  { %v188_v30 = vpop.permute.xlu0 %187   ;;  %v194_v31 = vpop.permute.xlu1 %193  }
  0xb1   :  { %190 = vst.msk [vmem:[#allocation0] sm:$0x1] %vm189_vm15, %v188_v30   ;;  %vm285_vm15 = vcmask 294160  }
  0xb2   :  { %196 = vst.msk [vmem:[#allocation0] sm:$0x1] %vm195_vm0, %v194_v31   ;;  %vm291_vm0 = vcmask 277760  }
  0xb4   :  { %v200_v32 = vpop.permute.xlu0 %199   ;;  %v206_v33 = vpop.permute.xlu1 %205  }
  0xb5   :  { %202 = vst.msk [vmem:[#allocation0] sm:$0x1] %vm201_vm1, %v200_v32   ;;  %vm297_vm1 = vcmask 261360  }
  0xb6   :  { %208 = vst.msk [vmem:[#allocation0] sm:$0x1] %vm207_vm2, %v206_v33   ;;  %vm303_vm2 = vcmask 244960  }
  0xb8   :  { %v212_v34 = vpop.permute.xlu0 %211   ;;  %v218_v35 = vpop.permute.xlu1 %217  }
  0xb9   :  { %214 = vst.msk [vmem:[#allocation0] sm:$0x1] %vm213_vm3, %v212_v34   ;;  %vm309_vm3 = vcmask 228560  }
  0xba   :  { %220 = vst.msk [vmem:[#allocation0] sm:$0x1] %vm219_vm4, %v218_v35   ;;  %vm315_vm4 = vcmask 212160  }
  0xbc   :  { %v224_v36 = vpop.permute.xlu0 %223   ;;  %v230_v37 = vpop.permute.xlu1 %229  }
  0xbd   :  { %226 = vst.msk [vmem:[#allocation0] sm:$0x1] %vm225_vm5, %v224_v36   ;;  %vm321_vm5 = vcmask 195760  }
  0xbe   :  { %232 = vst.msk [vmem:[#allocation0] sm:$0x1] %vm231_vm6, %v230_v37   ;;  %vm327_vm6 = vcmask 179360  }
  0xc0   :  { %v236_v38 = vpop.permute.xlu0 %235   ;;  %v242_v39 = vpop.permute.xlu1 %241  }
  0xc1   :  { %238 = vst.msk [vmem:[#allocation0] sm:$0x1] %vm237_vm7, %v236_v38   ;;  %vm333_vm7 = vcmask 162960  }
  0xc2   :  { %244 = vst.msk [vmem:[#allocation0] sm:$0x1] %vm243_vm8, %v242_v39   ;;  %vm339_vm8 = vcmask 146560  }
  0xc4   :  { %v248_v40 = vpop.permute.xlu0 %247   ;;  %v254_v41 = vpop.permute.xlu1 %253  }
  0xc5   :  { %250 = vst.msk [vmem:[#allocation0] sm:$0x1] %vm249_vm9, %v248_v40   ;;  %vm345_vm9 = vcmask 130160  }
  0xc6   :  { %256 = vst.msk [vmem:[#allocation0] sm:$0x1] %vm255_vm10, %v254_v41   ;;  %vm351_vm10 = vcmask 113760  }
  0xc8   :  { %v260_v42 = vpop.permute.xlu0 %259   ;;  %v266_v43 = vpop.permute.xlu1 %265  }
  0xc9   :  { %262 = vst.msk [vmem:[#allocation0] sm:$0x1] %vm261_vm11, %v260_v42   ;;  %vm357_vm11 = vcmask 97360  }
  0xca   :  { %268 = vst.msk [vmem:[#allocation0] sm:$0x1] %vm267_vm12, %v266_v43   ;;  %vm363_vm12 = vcmask 80960  }
  0xcc   :  { %v272_v44 = vpop.permute.xlu0 %271   ;;  %v278_v45 = vpop.permute.xlu1 %277  }
  0xcd   :  { %274 = vst.msk [vmem:[#allocation0] sm:$0x1] %vm273_vm13, %v272_v44   ;;  %vm369_vm13 = vcmask 64560  }
  0xce   :  { %280 = vst.msk [vmem:[#allocation0] sm:$0x1] %vm279_vm14, %v278_v45   ;;  %vm375_vm14 = vcmask 48160  }
  0xd0   :  { %v284_v46 = vpop.permute.xlu0 %283   ;;  %v290_v47 = vpop.permute.xlu1 %289  }
  0xd1   :  { %286 = vst.msk [vmem:[#allocation0] sm:$0x1] %vm285_vm15, %v284_v46   ;;  %vm381_vm15 = vcmask 31760  }
  0xd2   :  { %292 = vst.msk [vmem:[#allocation0] sm:$0x1] %vm291_vm0, %v290_v47  }
  0xd4   :  { %v296_v48 = vpop.permute.xlu0 %295   ;;  %v302_v49 = vpop.permute.xlu1 %301  }
  0xd5   :  { %298 = vst.msk [vmem:[#allocation0] sm:$0x1] %vm297_vm1, %v296_v48  }
  0xd6   :  { %304 = vst.msk [vmem:[#allocation0] sm:$0x1] %vm303_vm2, %v302_v49  }
  0xd8   :  { %v308_v50 = vpop.permute.xlu0 %307   ;;  %v314_v51 = vpop.permute.xlu1 %313  }
  0xd9   :  { %310 = vst.msk [vmem:[#allocation0] sm:$0x1] %vm309_vm3, %v308_v50  }
  0xda   :  { %316 = vst.msk [vmem:[#allocation0] sm:$0x1] %vm315_vm4, %v314_v51  }
  0xdc   :  { %v320_v52 = vpop.permute.xlu0 %319   ;;  %v326_v53 = vpop.permute.xlu1 %325  }
  0xdd   :  { %322 = vst.msk [vmem:[#allocation0] sm:$0x1] %vm321_vm5, %v320_v52  }
  0xde   :  { %328 = vst.msk [vmem:[#allocation0] sm:$0x1] %vm327_vm6, %v326_v53  }
  0xe0   :  { %v332_v54 = vpop.permute.xlu0 %331   ;;  %v338_v55 = vpop.permute.xlu1 %337  }
  0xe1   :  { %334 = vst.msk [vmem:[#allocation0] sm:$0x1] %vm333_vm7, %v332_v54  }
  0xe2   :  { %340 = vst.msk [vmem:[#allocation0] sm:$0x1] %vm339_vm8, %v338_v55  }
  0xe4   :  { %v344_v56 = vpop.permute.xlu0 %343   ;;  %v350_v57 = vpop.permute.xlu1 %349  }
  0xe5   :  { %346 = vst.msk [vmem:[#allocation0] sm:$0x1] %vm345_vm9, %v344_v56  }
  0xe6   :  { %352 = vst.msk [vmem:[#allocation0] sm:$0x1] %vm351_vm10, %v350_v57  }
  0xe8   :  { %v356_v58 = vpop.permute.xlu0 %355   ;;  %v362_v59 = vpop.permute.xlu1 %361  }
  0xe9   :  { %358 = vst.msk [vmem:[#allocation0] sm:$0x1] %vm357_vm11, %v356_v58  }
  0xea   :  { %364 = vst.msk [vmem:[#allocation0] sm:$0x1] %vm363_vm12, %v362_v59  }
  0xec   :  { %v368_v60 = vpop.permute.xlu0 %367   ;;  %v374_v61 = vpop.permute.xlu1 %373  }
  0xed   :  { %370 = vst.msk [vmem:[#allocation0] sm:$0x1] %vm369_vm13, %v368_v60  }
  0xee   :  { %376 = vst.msk [vmem:[#allocation0] sm:$0x1] %vm375_vm14, %v374_v61  }
  0xf0   :  { %v380_v62 = vpop.permute.xlu0 %379  }
  0xf1   :  { %382 = vst.msk [vmem:[#allocation0] sm:$0x1] %vm381_vm15, %v380_v62  }
  0xf8   :  { %v386_v63 = vld [vmem:[#allocation0] sm:$0x1] }
  0xf9   :  { %388 = vst [vmem:[%s784_s1] sm:$0x1] %v386_v63 }

// kernel: dist2cycle_forward.1
= control target key start
LH: loop header
LB: loop body
LE: loop exit
PB: predicated region body
PF: predicated region fallthrough
CT: control target
= control target key end

     0   :  { %s615_s1 = inlined_call_operand.vmem [shape: f32[512,128], index: 1, kind: input, shape index: {}]   ;;  %s616_s0 = inlined_call_operand.vmem [shape: f32[8,512], index: 0, kind: input, shape index: {}]   ;;  %s617_s2 = inlined_call_operand.vmem [shape: f32[1,128], index: 2, kind: input, shape index: {}]   ;;  %s618_s3 = inlined_call_operand.vmem [shape: f32[8,128], index: 3, kind: output, shape index: {}]  }
   0x1   :  { %v34_v0 = vld [vmem:[%s615_s1 + $0x80] sm:$0xff]  ;;  %v35_v1 = vld [vmem:[%s615_s1 + $0x88] sm:$0xff]  ;;  %v36_v11 = vld [vmem:[%s615_s1 + $0x90] sm:$0xff] }
   0x2   :  { %v18_v2 = vld [vmem:[%s615_s1] sm:$0xff]  ;;  %v317_v3 = vpack.c.bf16 %v35_v1, %v34_v0  ;;  %v19_v4 = vld [vmem:[%s615_s1 + $0x8] sm:$0xff]  ;;  %v37_v13 = vld [vmem:[%s615_s1 + $0x98] sm:$0xff] }
   0x3   :  { %v66_v5 = vld [vmem:[%s615_s1 + $0x180] sm:$0xff]  ;;  %v67_v6 = vld [vmem:[%s615_s1 + $0x188] sm:$0xff]  ;;  %v319_v7 = vpack.c.bf16 %v19_v4, %v18_v2  ;;  %v20_v14 = vld [vmem:[%s615_s1 + $0x10] sm:$0xff]  ;;  %v321_v16 = vpack.c.bf16 %v37_v13, %v36_v11 }
   0x4   :  { %v349_v8 = vpack.c.bf16 %v67_v6, %v66_v5  ;;  %v50_v9 = vld [vmem:[%s615_s1 + $0x100] sm:$0xff]  ;;  %v51_v10 = vld [vmem:[%s615_s1 + $0x108] sm:$0xff]  ;;  %318 = vmatprep.subr.bf16.mxu0 %v317_v3  ;;  %v21_v15 = vld [vmem:[%s615_s1 + $0x18] sm:$0xff] }
   0x5   :  { %v351_v12 = vpack.c.bf16 %v51_v10, %v50_v9  ;;  %320 = vmatpush3.bf16.msra.mxu0 %v319_v7  ;;  %v323_v17 = vpack.c.bf16 %v21_v15, %v20_v14  ;;  %v68_v18 = vld [vmem:[%s615_s1 + $0x190] sm:$0xff]  ;;  %v69_v19 = vld [vmem:[%s615_s1 + $0x198] sm:$0xff]  ;;  %v38_v23 = vld [vmem:[%s615_s1 + $0xa0] sm:$0xff] }
   0x6   :  { %350 = vmatprep.subr.bf16.mxu1 %v349_v8  ;;  %v52_v20 = vld [vmem:[%s615_s1 + $0x110] sm:$0xff]  ;;  %v353_v21 = vpack.c.bf16 %v69_v19, %v68_v18  ;;  %v53_v22 = vld [vmem:[%s615_s1 + $0x118] sm:$0xff]  ;;  %v39_v24 = vld [vmem:[%s615_s1 + $0xa8] sm:$0xff]  ;;  %322 = vmatprep.subr.bf16.mxu0 %v321_v16 }
   0x7   :  { %352 = vmatpush3.bf16.msra.mxu1 %v351_v12  ;;  %v355_v25 = vpack.c.bf16 %v53_v22, %v52_v20  ;;  %v325_v26 = vpack.c.bf16 %v39_v24, %v38_v23  ;;  %v22_v27 = vld [vmem:[%s615_s1 + $0x20] sm:$0xff]  ;;  %v23_v28 = vld [vmem:[%s615_s1 + $0x28] sm:$0xff]  ;;  %v40_v35 = vld [vmem:[%s615_s1 + $0xb0] sm:$0xff] }
   0x8   :  { %v70_v29 = vld [vmem:[%s615_s1 + $0x1a0] sm:$0xff]  ;;  %354 = vmatprep.subr.bf16.mxu1 %v353_v21  ;;  %v71_v30 = vld [vmem:[%s615_s1 + $0x1a8] sm:$0xff]  ;;  %v327_v33 = vpack.c.bf16 %v23_v28, %v22_v27  ;;  %v41_v36 = vld [vmem:[%s615_s1 + $0xb8] sm:$0xff] }
   0x9   :  { %v54_v31 = vld [vmem:[%s615_s1 + $0x120] sm:$0xff]  ;;  %v55_v32 = vld [vmem:[%s615_s1 + $0x128] sm:$0xff]  ;;  %324 = vmatpush3.bf16.msra.mxu0 %v323_v17  ;;  %v357_v34 = vpack.c.bf16 %v71_v30, %v70_v29  ;;  %v24_v37 = vld [vmem:[%s615_s1 + $0x30] sm:$0xff]  ;;  %v329_v39 = vpack.c.bf16 %v41_v36, %v40_v35 }
   0xa   :  { %326 = vmatprep.subr.bf16.mxu0 %v325_v26  ;;  %v359_v38 = vpack.c.bf16 %v55_v32, %v54_v31  ;;  %v25_v40 = vld [vmem:[%s615_s1 + $0x38] sm:$0xff]  ;;  %v72_v41 = vld [vmem:[%s615_s1 + $0x1b0] sm:$0xff]  ;;  %v42_v46 = vld [vmem:[%s615_s1 + $0xc0] sm:$0xff] }
   0xb   :  { %356 = vmatpush3.bf16.msra.mxu1 %v355_v25  ;;  %v73_v42 = vld [vmem:[%s615_s1 + $0x1b8] sm:$0xff]  ;;  %v56_v44 = vld [vmem:[%s615_s1 + $0x130] sm:$0xff]  ;;  %v43_v47 = vld [vmem:[%s615_s1 + $0xc8] sm:$0xff]  ;;  %v331_v48 = vpack.c.bf16 %v25_v40, %v24_v37 }
   0xc   :  { %358 = vmatprep.subr.bf16.mxu1 %v357_v34  ;;  %v361_v43 = vpack.c.bf16 %v73_v42, %v72_v41  ;;  %v57_v45 = vld [vmem:[%s615_s1 + $0x138] sm:$0xff]  ;;  %v74_v49 = vld [vmem:[%s615_s1 + $0x1c0] sm:$0xff]  ;;  %v75_v50 = vld [vmem:[%s615_s1 + $0x1c8] sm:$0xff]  ;;  %v333_v52 = vpack.c.bf16 %v43_v47, %v42_v46 }
   0xd   :  { %328 = vmatpush3.bf16.msra.mxu0 %v327_v33  ;;  %v363_v51 = vpack.c.bf16 %v57_v45, %v56_v44  ;;  %v26_v53 = vld [vmem:[%s615_s1 + $0x40] sm:$0xff]  ;;  %v27_v54 = vld [vmem:[%s615_s1 + $0x48] sm:$0xff]  ;;  %v365_v56 = vpack.c.bf16 %v75_v50, %v74_v49  ;;  %v44_v58 = vld [vmem:[%s615_s1 + $0xd0] sm:$0xff] }
   0xe   :  { %330 = vmatprep.subr.bf16.mxu0 %v329_v39  ;;  %v58_v55 = vld [vmem:[%s615_s1 + $0x140] sm:$0xff]  ;;  %v59_v57 = vld [vmem:[%s615_s1 + $0x148] sm:$0xff]  ;;  %v45_v59 = vld [vmem:[%s615_s1 + $0xd8] sm:$0xff]  ;;  %v335_v62 = vpack.c.bf16 %v27_v54, %v26_v53 }
   0xf   :  { %360 = vmatpush3.bf16.msra.mxu1 %v359_v38  ;;  %v76_v60 = vld [vmem:[%s615_s1 + $0x1d0] sm:$0xff]  ;;  %v77_v61 = vld [vmem:[%s615_s1 + $0x1d8] sm:$0xff]  ;;  %v367_v63 = vpack.c.bf16 %v59_v57, %v58_v55  ;;  %v337_v0 = vpack.c.bf16 %v45_v59, %v44_v58  ;;  %v46_v6 = vld [vmem:[%s615_s1 + $0xe0] sm:$0xff] }
  0x10   :  { %362 = vmatprep.subr.bf16.mxu1 %v361_v43  ;;  %v28_v1 = vld [vmem:[%s615_s1 + $0x50] sm:$0xff]  ;;  %v29_v2 = vld [vmem:[%s615_s1 + $0x58] sm:$0xff]  ;;  %v369_v4 = vpack.c.bf16 %v77_v61, %v76_v60  ;;  %v47_v7 = vld [vmem:[%s615_s1 + $0xe8] sm:$0xff] }
  0x11   :  { %332 = vmatpush3.bf16.msra.mxu0 %v331_v48  ;;  %v60_v3 = vld [vmem:[%s615_s1 + $0x150] sm:$0xff]  ;;  %v61_v5 = vld [vmem:[%s615_s1 + $0x158] sm:$0xff]  ;;  %v78_v8 = vld [vmem:[%s615_s1 + $0x1e0] sm:$0xff]  ;;  %v339_v10 = vpack.c.bf16 %v29_v2, %v28_v1  ;;  %v341_v14 = vpack.c.bf16 %v47_v7, %v46_v6 }
  0x12   :  { %334 = vmatprep.subr.bf16.mxu0 %v333_v52  ;;  %v79_v9 = vld [vmem:[%s615_s1 + $0x1e8] sm:$0xff]  ;;  %v30_v11 = vld [vmem:[%s615_s1 + $0x60] sm:$0xff]  ;;  %v371_v13 = vpack.c.bf16 %v61_v5, %v60_v3  ;;  %v48_v19 = vld [vmem:[%s615_s1 + $0xf0] sm:$0xff] }
  0x13   :  { %364 = vmatpush3.bf16.msra.mxu1 %v363_v51  ;;  %v31_v12 = vld [vmem:[%s615_s1 + $0x68] sm:$0xff]  ;;  %v62_v15 = vld [vmem:[%s615_s1 + $0x160] sm:$0xff]  ;;  %v373_v18 = vpack.c.bf16 %v79_v9, %v78_v8  ;;  %v49_v20 = vld [vmem:[%s615_s1 + $0xf8] sm:$0xff] }
  0x14   :  { %366 = vmatprep.subr.bf16.mxu1 %v365_v56  ;;  %v63_v16 = vld [vmem:[%s615_s1 + $0x168] sm:$0xff]  ;;  %v17_v21 = vld [vmem:[%s616_s0 + $0x18] sm:$0xff]  ;;  %v80_v22 = vld [vmem:[%s615_s1 + $0x1f0] sm:$0xff]  ;;  %v343_v24 = vpack.c.bf16 %v31_v12, %v30_v11  ;;  %v345_v26 = vpack.c.bf16 %v49_v20, %v48_v19 }
  0x15   :  { %336 = vmatpush3.bf16.msra.mxu0 %v335_v62  ;;  %v15_v17 = vld [vmem:[%s616_s0 + $0x8] sm:$0xff]  ;;  %v81_v23 = vld [vmem:[%s615_s1 + $0x1f8] sm:$0xff]  ;;  %223 = vmatprep.mubr.f32.mxu1 %v17_v21  ;;  %v375_v25 = vpack.c.bf16 %v63_v16, %v62_v15  ;;  %v32_v27 = vld [vmem:[%s615_s1 + $0x70] sm:$0xff] }
  0x16   :  { %338 = vmatprep.subr.bf16.mxu0 %v337_v0  ;;  %153 = vmatprep.mubr.f32.mxu0 %v15_v17  ;;  %v33_v28 = vld [vmem:[%s615_s1 + $0x78] sm:$0xff]  ;;  %v377_v29 = vpack.c.bf16 %v81_v23, %v80_v22  ;;  %v64_v30 = vld [vmem:[%s615_s1 + $0x170] sm:$0xff]  ;;  %v14_v34 = vld [vmem:[%s616_s0] sm:$0xff] }
  0x17   :  { %368 = vmatpush3.bf16.msra.mxu1 %v367_v63  ;;  %v65_v31 = vld [vmem:[%s615_s1 + $0x178] sm:$0xff]  ;;  %v347_v32 = vpack.c.bf16 %v33_v28, %v32_v27  ;;  %v16_v35 = vld [vmem:[%s616_s0 + $0x10] sm:$0xff]  ;;  %v246_v37 = vld [vmem:[%s617_s2] ss:$0 sm:$0xff] }
  0x18   :  { %370 = vmatprep.subr.bf16.mxu1 %v369_v4  ;;  %v379_v33 = vpack.c.bf16 %v65_v31, %v64_v30 }
  0x19   :  { %340 = vmatpush3.bf16.msra.mxu0 %v339_v10 }
  0x1a   :  { %342 = vmatprep.subr.bf16.mxu0 %v341_v14 }
  0x1b   :  { %372 = vmatpush3.bf16.msra.mxu1 %v371_v13 }
  0x1c   :  { %374 = vmatprep.subr.bf16.mxu1 %v373_v18 }
  0x1d   :  { %344 = vmatpush3.bf16.msra.mxu0 %v343_v24 }
  0x1e   :  { %346 = vmatprep.subr.bf16.mxu0 %v345_v26 }
  0x1f   :  { %376 = vmatpush3.bf16.msra.mxu1 %v375_v25 }
  0x20   :  { %378 = vmatprep.subr.bf16.mxu1 %v377_v29 }
  0x21   :  { %348 = vmatpush3.bf16.msra.mxu0 %v347_v32 }
  0x23   :  { %380 = vmatpush3.bf16.msra.mxu1 %v379_v33 }
  0x24   :  { %154 = vmatmul.mubr.f32.vlgmr.msra.gmra.mrb[0].mxu0 %v14_v34 }
  0x26   :  { %224 = vmatmul.mubr.f32.vlgmr.msra.gmra.mrb[0].mxu1 %v16_v35 }
  0xf7   :  { %v279_v36 = vpop.f32.mrb[0].mxu0 }
  0xf8   :  { %v280_v38 = vpop.f32.mrb[1].mxu0 }
  0xf9   :  { %v314_v39 = vpop.f32.mrb[0].mxu1  ;;  %v281_v40 = vadd.f32 %v280_v38, %v279_v36 }
  0xfa   :  { %v315_v41 = vpop.f32.mrb[1].mxu1 }
  0xfb   :  { %v316_v42 = vadd.f32 %v315_v41, %v314_v39  ;;  %v156_v43 = vadd.f32 %v281_v40, %v246_v37 }
  0xfd   :  { %v226_v44 = vadd.f32 %v316_v42, %v156_v43 }
  0xff   :  { %v229_v45 = vand.u32 2147483647, %v226_v44  ;;  %vm238_vm0 = vcmp.ge.f32.partialorder %v226_v44, 0.0 }
 0x101   :  { %v230_v46 = vsub.f32 0.0, %v229_v45 }
 0x103   :  { %v231_v47 = vmul.f32 1.442695, %v230_v46 }
 0x105   :  { %381 = vpow2.f32 %v231_v47 }
 0x10f   :  { %v382_v48 = vpop.eup %381 }
 0x110   :  { %v233_v49 = vadd.f32 1.0, %v382_v48 }
 0x112   :  { %383 = vrcp.f32 %v233_v49 }
 0x11c   :  { %v384_v50 = vpop.eup %383 }
 0x11d   :  { %v235_v51 = vmul.f32 %v384_v50, %v233_v49 }
 0x11f   :  { %v236_v52 = vsub.f32 2.0, %v235_v51 }
 0x121   :  { %v237_v53 = vmul.f32 %v384_v50, %v236_v52 }
 0x123   :  { %v239_v54 = vmul.f32 %v382_v48, %v237_v53 }
 0x125   :  { %v240_v55 = vsel %vm238_vm0, %v237_v53, %v239_v54 }
 0x126   :  { %241 = vst [vmem:[%s618_s3] sm:$0xff] %v240_v55 }

</bundles_post_ra>
